<compile_context>
chip_gen: v5e
topology: v5e:2x2
jax: 0.10.0
libtpu: 0.0.40
codegen_flags: <defaults>
</compile_context>

<pallas_src>
import functools
import math

import jax
import jax.numpy as jnp
from jax.experimental import pallas as pl
from jax.experimental.pallas import tpu as pltpu


def _round_up(v, m):
    return ((v + m - 1) // m) * m


def _fused_kan_kernel(x_ref, *refs, num_layers, rs, num_x):
    """Fused forward over all FCNKANInterpoLayer layers for one batch tile.

    x_ref           : (TB, Din0)             f32 input activations (batch tile)
    refs[2*l]       : (1, Din_l*K)           f32 centers, i-major tiling of X
    refs[2*l + 1]   : (Din_l*K, Dout_l[_pad]) bf16 weights (Y -> (Din,K,Dout))
    refs[-1]        : (TB, Dout_pad)         f32 output
    """
    o_ref = refs[-1]
    act = x_ref[...]                                          # (TB, Din) f32
    for l in range(num_layers):
        mu = refs[2 * l][...]                                 # (1, Din*K)
        w = refs[2 * l + 1][...]                              # (Din*K, Dout) bf16
        r = rs[l]
        tb, din = act.shape
        # Replicate activations once so all subsequent VPU work is lane-dense:
        #   x_rep[b, i*K + k] = act[b, i]
        x_rep = jnp.broadcast_to(act[:, :, None], (tb, din, num_x)).reshape(
            tb, din * num_x)
        xm = x_rep - mu
        # heaviside_theta hat basis (f32 on the VPU):
        #   hat = (clip(x - mu + r, 0, r) - clip(x - mu, 0, r)) / r
        hat = (jnp.clip(xm + r, 0.0, r) - jnp.clip(xm, 0.0, r)) * (1.0 / r)
        # sum_{i,k} hat * Y[i,j,k]  ==  one MXU matmul (bf16 in, f32 acc).
        act = jnp.dot(hat.astype(jnp.bfloat16), w,
                      preferred_element_type=jnp.float32)
    o_ref[...] = act.astype(o_ref.dtype)


def fcn_interpokan_forward(params, x, *, batch_tile=256):
    """Runs the whole FCN_InterpoKAN stack in a single pallas_call."""
    b, din0 = x.shape
    num_layers = len(params)
    num_x = params[0]["num_x"]
    dout_last = params[-1]["W"].shape[1]
    dout_pad = _round_up(dout_last, 128)     # lane-dense output stores

    # Batch tiling: multiple of 8 sublanes; pad batch so it divides evenly.
    tb = _round_up(int(min(batch_tile, _round_up(b, 8))), 8)
    b_pad = _round_up(b, tb)
    if b_pad != b:
        x = jnp.pad(x, ((0, b_pad - b), (0, 0)))
    grid = (b_pad // tb,)

    flat_inputs = [x]
    in_specs = [pl.BlockSpec((tb, din0), lambda i: (i, 0))]
    for li, p in enumerate(params):
        w = p["W"]
        if li == num_layers - 1 and dout_pad != dout_last:
            # Zero-pad the final weight columns -> padded output cols are zero.
            w = jnp.pad(w, ((0, 0), (0, dout_pad - dout_last)))
        flat_inputs += [p["mu_flat"], w]
        in_specs += [
            pl.BlockSpec(p["mu_flat"].shape, lambda i: (0, 0)),
            pl.BlockSpec(w.shape, lambda i: (0, 0)),
        ]

    flops = int(sum(2 * b_pad * p["Y"].shape[0] * p["num_x"] * p["Y"].shape[1]
                    for p in params))
    bytes_accessed = int(
        x.size * 4
        + sum(p["mu_flat"].size * 4 + p["W"].size * 2 for p in params)
        + b_pad * dout_pad * 4)

    kernel = functools.partial(
        _fused_kan_kernel,
        num_layers=num_layers,
        rs=tuple(p["r"] for p in params),
        num_x=num_x)

    out = pl.pallas_call(
        kernel,
        out_shape=jax.ShapeDtypeStruct((b_pad, dout_pad), jnp.float32),
        grid=grid,
        in_specs=in_specs,
        out_specs=pl.BlockSpec((tb, dout_pad), lambda i: (i, 0)),
        compiler_params=pltpu.CompilerParams(
            dimension_semantics=("parallel",)),
        cost_estimate=pl.CostEstimate(
            flops=flops, transcendentals=0, bytes_accessed=bytes_accessed),
    )(*flat_inputs)
    return out[:b, :dout_last]


def init_fcn_interpokan(key, layers_hidden, num_x=8, x_min=-2.0, x_max=2.0):
    """Deterministic parameter init mirroring FCN_InterpoKAN.__init__."""
    params = []
    for din, dout in zip(layers_hidden[:-1], layers_hidden[1:]):
        key, sub = jax.random.split(key)
        # torch.nn.init.xavier_uniform_ on a (din, dout, num_x) tensor:
        #   fan_in = dout * num_x, fan_out = din * num_x
        fan_in = dout * num_x
        fan_out = din * num_x
        bound = math.sqrt(6.0 / (fan_in + fan_out))
        Y = jax.random.uniform(
            sub, (din, dout, num_x), jnp.float32, minval=-bound, maxval=bound)
        X = jnp.linspace(x_min, x_max, num_x, dtype=jnp.float32)       # (K,)
        r = float(X[1] - X[0])                                          # grid spacing
        # i-major flattening (p = i*K + k) used by the kernel:
        mu_flat = jnp.broadcast_to(X[None, :], (din, num_x)).reshape(1, din * num_x)
        W = jnp.transpose(Y, (0, 2, 1)).reshape(din * num_x, dout).astype(jnp.bfloat16)
        params.append({"mu_flat": mu_flat, "W": W, "Y": Y, "X": X,
                       "r": r, "num_x": num_x})
    return params


def reference_forward_f32(params, x):
    """Pure-f32 jnp mirror of the PyTorch forward (the spec semantics)."""
    for p in params:
        Y, X, r = p["Y"], p["X"], p["r"]
        xm = x[:, :, None] - X[None, None, :]                          # (B, Din, K)
        hat = (jnp.clip(xm + r, 0.0, r) - jnp.clip(xm, 0.0, r)) / r
        x = jnp.einsum("bik,ijk->bj", hat, Y)                          # (B, Dout)
    return x


def reference_forward_bf16(params, x):
    """jnp mirror of the kernel math (bf16 MXU operands, f32 accumulate)."""
    for p in params:
        r, k = p["r"], p["num_x"]
        b, din = x.shape
        x_rep = jnp.broadcast_to(x[:, :, None], (b, din, k)).reshape(b, din * k)
        xm = x_rep - p["mu_flat"]
        hat = (jnp.clip(xm + r, 0.0, r) - jnp.clip(xm, 0.0, r)) * (1.0 / r)
        x = jnp.dot(hat.astype(jnp.bfloat16), p["W"],
                    preferred_element_type=jnp.float32)
    return x


if __name__ == "__main__":
    key = jax.random.PRNGKey(0)
    layers_hidden = [4, 32, 8]   # FCN_InterpoKAN(layers_hidden), num_x=8 per layer
    batch = 16

    key, pkey, xkey = jax.random.split(key, 3)
    params = init_fcn_interpokan(pkey, layers_hidden, num_x=8, x_min=-2.0, x_max=2.0)
    x = jax.random.uniform(
        xkey, (batch, layers_hidden[0]), jnp.float32, minval=-2.0, maxval=2.0)

    # batch_tile=8 -> grid=(2,) exercises the batch grid / "parallel" axis.
    out = jax.block_until_ready(fcn_interpokan_forward(params, x, batch_tile=8))
    assert out.shape == (batch, layers_hidden[-1])

    ref_bf16 = jax.block_until_ready(reference_forward_bf16(params, x))
    ref_f32 = jax.block_until_ready(reference_forward_f32(params, x))

    # Tight check against a reference that mimics the kernel's bf16 matmuls.
    assert jnp.allclose(out, ref_bf16, atol=5e-3, rtol=5e-3), \
        "mismatch vs bf16-mimic reference"
    # Loosened check against the pure-f32 (PyTorch-semantics) reference,
    # accounting for bf16 MXU operands with f32 accumulation.
    assert jnp.allclose(out, ref_f32, atol=3e-2, rtol=3e-2), \
        "mismatch vs f32 reference"

    print("KERNEL_OK")
</pallas_src>

<mosaic_0001>
module attributes {stable_mosaic.version = 11 : i64} {
  func.func @_fused_kan_kernel(%arg0: i32, %arg1: memref<8x4xf32, #tpu.memory_space<vmem>>, %arg2: memref<1x32xf32, #tpu.memory_space<vmem>>, %arg3: memref<32x32xbf16, #tpu.memory_space<vmem>>, %arg4: memref<1x256xf32, #tpu.memory_space<vmem>>, %arg5: memref<256x128xbf16, #tpu.memory_space<vmem>>, %arg6: memref<8x128xf32, #tpu.memory_space<vmem>>) attributes {dimension_semantics = [#tpu.dimension_semantics<parallel>], iteration_bounds = array<i64: 2>, scalar_prefetch = 0 : i64, scratch_operands = 0 : i64, tpu.core_type = #tpu.core_type<tc>, window_params = [{transform_indices = @transform_0, window_bounds = array<i64: 8, 4>}, {pipeline_mode = #tpu.pipeline_mode<synchronous>, transform_indices = @transform_1, window_bounds = array<i64: 1, 32>}, {pipeline_mode = #tpu.pipeline_mode<synchronous>, transform_indices = @transform_2, window_bounds = array<i64: 32, 32>}, {pipeline_mode = #tpu.pipeline_mode<synchronous>, transform_indices = @transform_3, window_bounds = array<i64: 1, 256>}, {pipeline_mode = #tpu.pipeline_mode<synchronous>, transform_indices = @transform_4, window_bounds = array<i64: 256, 128>}, {transform_indices = @transform_5, window_bounds = array<i64: 8, 128>}]} {
    %c0 = arith.constant 0 : index
    %c0_0 = arith.constant 0 : index
    %0 = vector.load %arg1[%c0, %c0_0] : memref<8x4xf32, #tpu.memory_space<vmem>>, vector<8x4xf32>
    %c0_1 = arith.constant 0 : index
    %c0_2 = arith.constant 0 : index
    %1 = vector.load %arg2[%c0_1, %c0_2] : memref<1x32xf32, #tpu.memory_space<vmem>>, vector<1x32xf32>
    %c0_3 = arith.constant 0 : index
    %c0_4 = arith.constant 0 : index
    %2 = vector.load %arg3[%c0_3, %c0_4] : memref<32x32xbf16, #tpu.memory_space<vmem>>, vector<32x32xbf16>
    %3 = vector.shape_cast %0 : vector<8x4xf32> to vector<8x4x1xf32>
    %4 = vector.shape_cast %3 : vector<8x4x1xf32> to vector<8x4x1xf32>
    %5 = vector.broadcast %4 : vector<8x4x1xf32> to vector<8x4x8xf32>
    %6 = vector.shape_cast %5 : vector<8x4x8xf32> to vector<8x32xf32>
    %7 = vector.broadcast %1 : vector<1x32xf32> to vector<8x32xf32>
    %8 = arith.subf %6, %7 : vector<8x32xf32>
    %cst = arith.constant 0.571428537 : f32
    %9 = vector.broadcast %cst : f32 to vector<8x32xf32>
    %10 = arith.addf %8, %9 : vector<8x32xf32>
    %cst_5 = arith.constant 0.000000e+00 : f32
    %cst_6 = arith.constant 0.571428537 : f32
    %11 = vector.broadcast %cst_5 : f32 to vector<8x32xf32>
    %12 = arith.maximumf %11, %10 : vector<8x32xf32>
    %13 = vector.broadcast %cst_6 : f32 to vector<8x32xf32>
    %14 = arith.minimumf %13, %12 : vector<8x32xf32>
    %cst_7 = arith.constant 0.000000e+00 : f32
    %cst_8 = arith.constant 0.571428537 : f32
    %15 = vector.broadcast %cst_7 : f32 to vector<8x32xf32>
    %16 = arith.maximumf %15, %8 : vector<8x32xf32>
    %17 = vector.broadcast %cst_8 : f32 to vector<8x32xf32>
    %18 = arith.minimumf %17, %16 : vector<8x32xf32>
    %19 = arith.subf %14, %18 : vector<8x32xf32>
    %cst_9 = arith.constant 1.75000012 : f32
    %20 = vector.broadcast %cst_9 : f32 to vector<8x32xf32>
    %21 = arith.mulf %19, %20 : vector<8x32xf32>
    %22 = arith.truncf %21 : vector<8x32xf32> to vector<8x32xbf16>
    %cst_10 = arith.constant dense<0.000000e+00> : vector<8x32xf32>
    %23 = tpu.matmul %22, %2, %cst_10 {dimension_numbers = #tpu.dot_dimension_numbers<[1], [0], [0], [1], [0, 0, 1, 1], [], []>} : vector<8x32xbf16>, vector<32x32xbf16>, vector<8x32xf32> -> vector<8x32xf32>
    %c0_11 = arith.constant 0 : index
    %c0_12 = arith.constant 0 : index
    %24 = vector.load %arg4[%c0_11, %c0_12] : memref<1x256xf32, #tpu.memory_space<vmem>>, vector<1x256xf32>
    %c0_13 = arith.constant 0 : index
    %c0_14 = arith.constant 0 : index
    %25 = vector.load %arg5[%c0_13, %c0_14] : memref<256x128xbf16, #tpu.memory_space<vmem>>, vector<256x128xbf16>
    %26 = vector.shape_cast %23 : vector<8x32xf32> to vector<8x32x1xf32>
    %27 = vector.shape_cast %26 : vector<8x32x1xf32> to vector<8x32x1xf32>
    %28 = vector.broadcast %27 : vector<8x32x1xf32> to vector<8x32x8xf32>
    %29 = vector.shape_cast %28 : vector<8x32x8xf32> to vector<8x256xf32>
    %30 = vector.broadcast %24 : vector<1x256xf32> to vector<8x256xf32>
    %31 = arith.subf %29, %30 : vector<8x256xf32>
    %cst_15 = arith.constant 0.571428537 : f32
    %32 = vector.broadcast %cst_15 : f32 to vector<8x256xf32>
    %33 = arith.addf %31, %32 : vector<8x256xf32>
    %cst_16 = arith.constant 0.000000e+00 : f32
    %cst_17 = arith.constant 0.571428537 : f32
    %34 = vector.broadcast %cst_16 : f32 to vector<8x256xf32>
    %35 = arith.maximumf %34, %33 : vector<8x256xf32>
    %36 = vector.broadcast %cst_17 : f32 to vector<8x256xf32>
    %37 = arith.minimumf %36, %35 : vector<8x256xf32>
    %cst_18 = arith.constant 0.000000e+00 : f32
    %cst_19 = arith.constant 0.571428537 : f32
    %38 = vector.broadcast %cst_18 : f32 to vector<8x256xf32>
    %39 = arith.maximumf %38, %31 : vector<8x256xf32>
    %40 = vector.broadcast %cst_19 : f32 to vector<8x256xf32>
    %41 = arith.minimumf %40, %39 : vector<8x256xf32>
    %42 = arith.subf %37, %41 : vector<8x256xf32>
    %cst_20 = arith.constant 1.75000012 : f32
    %43 = vector.broadcast %cst_20 : f32 to vector<8x256xf32>
    %44 = arith.mulf %42, %43 : vector<8x256xf32>
    %45 = arith.truncf %44 : vector<8x256xf32> to vector<8x256xbf16>
    %cst_21 = arith.constant dense<0.000000e+00> : vector<8x128xf32>
    %46 = tpu.matmul %45, %25, %cst_21 {dimension_numbers = #tpu.dot_dimension_numbers<[1], [0], [0], [1], [0, 0, 1, 1], [], []>} : vector<8x256xbf16>, vector<256x128xbf16>, vector<8x128xf32> -> vector<8x128xf32>
    %c0_22 = arith.constant 0 : index
    %c0_23 = arith.constant 0 : index
    %47 = vector.load %arg6[%c0_22, %c0_23] : memref<8x128xf32, #tpu.memory_space<vmem>>, vector<8x128xf32>
    tpu.vector_store %arg6[%c0_22, %c0_23], %46 {strides = array<i32>} : memref<8x128xf32, #tpu.memory_space<vmem>>, vector<8x128xf32>,
    return
  }
  func.func @transform_0(%arg0: i32) -> (i32, i32) {
    %c0_i32 = arith.constant 0 : i32
    %c0_i32_0 = arith.constant 0 : i32
    return %arg0, %c0_i32 : i32, i32
  }
  func.func @transform_1(%arg0: i32) -> (i32, i32) {
    %c0_i32 = arith.constant 0 : i32
    %c0_i32_0 = arith.constant 0 : i32
    %c0_i32_1 = arith.constant 0 : i32
    return %c0_i32, %c0_i32_0 : i32, i32
  }
  func.func @transform_2(%arg0: i32) -> (i32, i32) {
    %c0_i32 = arith.constant 0 : i32
    %c0_i32_0 = arith.constant 0 : i32
    %c0_i32_1 = arith.constant 0 : i32
    return %c0_i32, %c0_i32_0 : i32, i32
  }
  func.func @transform_3(%arg0: i32) -> (i32, i32) {
    %c0_i32 = arith.constant 0 : i32
    %c0_i32_0 = arith.constant 0 : i32
    %c0_i32_1 = arith.constant 0 : i32
    return %c0_i32, %c0_i32_0 : i32, i32
  }
  func.func @transform_4(%arg0: i32) -> (i32, i32) {
    %c0_i32 = arith.constant 0 : i32
    %c0_i32_0 = arith.constant 0 : i32
    %c0_i32_1 = arith.constant 0 : i32
    return %c0_i32, %c0_i32_0 : i32, i32
  }
  func.func @transform_5(%arg0: i32) -> (i32, i32) {
    %c0_i32 = arith.constant 0 : i32
    %c0_i32_0 = arith.constant 0 : i32
    return %arg0, %c0_i32 : i32, i32
  }
}

</mosaic_0001>

<bundles_post_ra>
// kernel: tpu_custom_call.1
= control target key start
LH: loop header
LB: loop body
LE: loop exit
PB: predicated region body
PF: predicated region fallthrough
CT: control target
= control target key end

     0   :  { %10 = vsyncpa [#allocation3], 0  ;;  %s2290_s0 = inlined_call_operand.vmem [shape: f32[16,4], index: 0, kind: input, shape index: {}]   ;;  %s2291_s1 = inlined_call_operand.vmem [shape: f32[1,32], index: 1, kind: input, shape index: {}]   ;;  %s2292_s2 = inlined_call_operand.vmem [shape: bf16[32,32], index: 2, kind: input, shape index: {}]   ;;  %s2293_s3 = inlined_call_operand.vmem [shape: f32[1,256], index: 3, kind: input, shape index: {}]   ;;  %s2294_s4 = inlined_call_operand.hbm [shape: bf16[256,128], index: 4, kind: input, shape index: {}]   ;;  %s2295_s5 = inlined_call_operand.hbm [shape: f32[16,128], index: 5, kind: output, shape index: {}]  }
   0x1   :  { %11 = vsyncpa [#allocation4], 0 }
   0x2   :  { %13 = vsyncpa [#allocation4 + $0x1], 0  ;;  %s1831_s18 = smov 0   ;;  %s1833_s19 = smov 0  }
   0x3   :  { %s1835_s20 = smov 0   ;;  %s1837_s21 = smov 0  }
   0x4 LB: > { %s1852_s22 = sadd.s32 4294967295, %s1779_s21   ;;  %s1491_s23 = sadd.s32 4294967294, %s1779_s21   ;;  %s1779_s21 = sphi %s1837_s21, %s2301_s21   ;;  %s1775_s20 = sphi %s1835_s20, %s2300_s20   ;;  %s1771_s19 = sphi %s1833_s19, %s2299_s19   ;;  %s1767_s18 = sphi %s1831_s18, %s2298_s18  }
   0x5   : > { %s1856_s24 = sadd.s32 1, %s1779_s21   ;;  %s136_s25 = sadd.s32 1, %s1775_s20 }
   0x6   : > { %s133_s26 = ssub.s32 %s1779_s21, %s1856_s24  ;;  %p146_p0 = scmp.ne.s32.totalorder %s1775_s20, %s1771_s19 }
   0x7   : > { %p134_p1 = scmp.eq.s32.totalorder %s133_s26, 0  ;;  %p147_p2 = scmp.eq.s32.totalorder %s1852_s22, 1 }
   0x8   : > { %p152_p3 = scmp.ne.s32.totalorder %s1771_s19, %s1767_s18  ;;  %p153_p4 = scmp.eq.s32.totalorder %s1491_s23, 1 }
   0x9   : > { %s1867_s27 = scalar_select %p134_p1, %s1775_s20, %s136_s25  }
   0xa   : > { %p1869_p5 = por %p147_p2, %p146_p0  ;;  %p1873_p6 = por %p153_p4, %p152_p3 }
   0xb   : > { %p1492_p7 = scmp.ge.s32.totalorder %s1779_s21, 1  ;;  %p160_p8 = scmp.lt.s32.totalorder %s1779_s21, 3 }
   0xc   : > { %p1608_p9 = scmp.eq.s32.totalorder %s1852_s22, 0  ;;  %s180_s7 = sshll.u32 %s2294_s4, 4  ;;  %s181_s7 = int_to_ptr.hbm [resolvable:$true] %s180_s7 }
   0xd   : > { %p161_p10 = pnand %p1492_p7, %p160_p8  ;;  %s1781_s8 = smov [#allocation2]  }
   0xe   : > { %s182_s9 = sshll.u32 %s1781_s8, 4  ;;  %s1782_s10 = smov 64   ;;  %s183_s9 = int_to_ptr.vmem [resolvable:$true] %s182_s9 }
   0xf   : > { %p1600_p11 = pneg %p161_p10  ;;  %s1783_s11 = smov 4  }
  0x10   : > { %205 = sbr.rel (%p161_p10) target bundleno = 961 (0x3c1), region = 40 }
  0x11   : > { %p1601_p12 = pnand %p1608_p9, %p1600_p11 }
  0x13   : > { %1603 = dma.hbm_to_vmem [thread:$0]  (!%p1601_p12), %s181_s7, 2048, %s183_s9, [#allocation3], %s1782_s10, %s1782_s10, %s1783_s11  }
  0x15   : > { %1758 = dma.done.wait (%p1608_p9), [#allocation3], 2048  }
  0x16   : > { %1760 = vsyncadd (%p1608_p9), [#allocation3], 4294965248  ;;  %v245_v0 = vlaneseq  ;;  %p233_p13 = scmp.lt.s32.totalorder %s1852_s22, 1  ;;  %v1784_v14 = vmov 1983009808   ;;  %vm301_vm0 = vcmask 1047556  }
  0x17   : > { %v304_v15 = vunpack.c.l.s4 %v1784_v14  ;;  %v1785_v24 = vmov 1934713408   ;;  %s1786_s17 = smov 16   ;;  %s1787_s23 = smov 8   ;;  %v1577_v57 = vld [vmem:[%s2292_s2 + $0x8] sm:$0xff]  ;;  %v1576_v58 = vld [vmem:[%s2292_s2] sm:$0xff] }
  0x18   : > { %v1890_v1 = vshrl.u32 %v245_v0, 7  ;;  %s234_s12 = scalar_select %p233_p13, %s1852_s22, 1  ;;  %v330_v25 = vunpack.c.l.s4 %v1785_v24  ;;  %409 = vmatpush.bf16.msra.mxu0 %v1577_v57  ;;  %vm369_vm1 = vcmask 64512   ;;  %vm371_vm2 = vcmask 130048   ;;  %v1682_v0 = vld [vmem:[%s2291_s1] ss:$0 sm:$0xff] }
  0x19   : > { %v1899_v20 = vunpack.c.0.s8 %v304_v15  ;;  %s1788_s25 = smov 24   ;;  %vm373_vm3 = vcmask 195584   ;;  %vm399_vm4 = vcmask 261120   ;;  %s1789_s10 = smov 32   ;;  %vm1221_vm5 = vcmask 326656  }
  0x1a   : > { %1664 = vset.pattern.permute.xlu1 %v1890_v1  ;;  %1663 = vset.pattern.permute.xlu0 %v1890_v1  ;;  %s1498_s13 = sshll.u32 %s234_s12, 3  ;;  %v1907_v34 = vunpack.c.0.s8 %v330_v25  ;;  %v464_v59 = vadd.s32 16, %v1890_v1  ;;  %v1934_v60 = vadd.s32 8, %v1890_v1  ;;  %s1790_s11 = smov 40   ;;  %vm1223_vm6 = vcmask 392192  }
  0x1b   : > { %s236_s16 = scalar_lea.vmem %s2290_s0, %s1498_s13  ;;  %1665 = vset.pattern.permute.xlu2 %v1890_v1  ;;  %s1791_s12 = smov 48   ;;  %vm1225_vm7 = vcmask 457728   ;;  %vm1227_vm8 = vcmask 523264   ;;  %vm1229_vm9 = vcmask 588800   ;;  %vm1231_vm10 = vcmask 654336  }
  0x1c   : > { %v238_v2 = vld [vmem:[%s236_s16] sm:$0xff]  ;;  %410 = vmatpush.bf16.msra.mxu0 %v1576_v58  ;;  %s1792_s13 = smov 56   ;;  %s1793_s14 = smov 64   ;;  %vm1233_vm11 = vcmask 719872   ;;  %vm1235_vm12 = vcmask 785408   ;;  %vm1237_vm13 = vcmask 850944  }
  0x1d   : > { %v265_v3 = vperm.slane %v238_v2, 3  ;;  %v251_v4 = vperm.slane %v238_v2, 1  ;;  %v293_v5 = vperm.slane %v238_v2, 7  ;;  %v286_v6 = vperm.slane %v238_v2, 6  ;;  %s1794_s15 = smov 80   ;;  %s1795_s16 = smov 72  }
  0x1e   : > { %v258_v7 = vperm.slane %v238_v2, 2  ;;  %v272_v8 = vperm.slane %v238_v2, 4  ;;  %v279_v9 = vperm.slane %v238_v2, 5  ;;  %v244_v10 = vperm.slane %v238_v2, 0  ;;  %s1799_s26 = smov 112   ;;  %s1800_s30 = smov 120  }
  0x1f   : > { %vm1239_vm14 = vcmask 916480   ;;  %vm1241_vm15 = vcmask 982016   ;;  %s230_s8 = sand.u32 1, %s1771_s19   ;;  %s1573_s9 = sshll.u32 %s1852_s22, 3 }
  0x22   : > { %270 = vperm.xlu0 %1663, %v265_v3   ;;  %256 = vperm.xlu1 %1664, %v251_v4  }
  0x23   : > { %298 = vperm.xlu2 %1665, %v293_v5  }
  0x2a   : > { %291 = vperm.xlu0 %1663, %v286_v6   ;;  %263 = vperm.xlu1 %1664, %v258_v7  }
  0x2b   : > { %277 = vperm.xlu2 %1665, %v272_v8  }
  0x32   : > { %284 = vperm.xlu1 %1664, %v279_v9   ;;  %249 = vperm.xlu0 %1663, %v244_v10  }
  0x3a   : > { %1667 = vset.pattern.permute.xlu1 %v464_v59  ;;  %1666 = vset.pattern.permute.xlu0 %v1934_v60 }
  0x7d   : > { %v299_v11 = vpop.permute.xlu2 %298 }
  0x7e   : > { %v319_v28 = vrot.slane %v299_v11, 4 }
  0x85   : > { %v278_v21 = vpop.permute.xlu2 %277 }
  0x94   : > { %v271_v12 = vpop.permute.xlu0 %270  ;;  %v257_v13 = vpop.permute.xlu1 %256 }
  0x95   : > { %v307_v16 = vrot.slane %v271_v12, 4 }
  0x97   : > { %v308_v22 = vsel %vm301_vm0, %v307_v16, %v257_v13 }
  0x98   : > { %v312_v26 = vperm.slane %v308_v22, %v1899_v20 }
  0x9a   : > { %v325_v35 = vrot.slane %v312_v26, 4 }
  0x9c   : > { %v292_v17 = vpop.permute.xlu0 %291  ;;  %v264_v18 = vpop.permute.xlu1 %263 }
  0x9d   : > { %v313_v19 = vrot.slane %v292_v17, 4  ;;  %v300_v29 = vrot.slane %v264_v18, 4  ;;  %v470_v17 = vadd.s32 24, %v1890_v1 }
  0x9f   : > { %v314_v23 = vsel %vm301_vm0, %v313_v19, %v278_v21 }
  0xa0   : > { %v318_v27 = vperm.slane %v314_v23, %v1899_v20 }
  0xa2   : > { %v339_v36 = vrot.slane %v318_v27, 4 }
  0xa4   : > { %v285_v30 = vpop.permute.xlu1 %284  ;;  %v250_v31 = vpop.permute.xlu0 %249 }
  0xa5   : > { %v320_v32 = vsel %vm301_vm0, %v319_v28, %v285_v30  ;;  %v302_v33 = vsel %vm301_vm0, %v300_v29, %v250_v31 }
  0xa6   : > { %v324_v37 = vperm.slane %v320_v32, %v1899_v20  ;;  %v306_v38 = vperm.slane %v302_v33, %v1899_v20 }
  0xa8   : > { %v337_v39 = vrot.slane %v324_v37, 4  ;;  %v340_v40 = vsel %vm301_vm0, %v324_v37, %v339_v36  ;;  %v326_v41 = vsel %vm301_vm0, %v325_v35, %v306_v38  ;;  %v327_v42 = vrot.slane %v306_v38, 4 }
  0xa9   : > { %v348_v43 = vperm.slane %v340_v40, %v1907_v34  ;;  %v332_v44 = vperm.slane %v326_v41, %v1907_v34 }
  0xaa   : > { %v328_v45 = vsel %vm301_vm0, %v312_v26, %v327_v42  ;;  %v338_v46 = vsel %vm301_vm0, %v337_v39, %v318_v27 }
  0xab   : > { %v336_v47 = vperm.slane %v328_v45, %v1907_v34  ;;  %v353_v48 = vrot.slane %v348_v43, 4  ;;  %v344_v49 = vperm.slane %v338_v46, %v1907_v34  ;;  %v351_v50 = vrot.slane %v332_v44, 4 }
  0xad   : > { %v354_v51 = vsel %vm301_vm0, %v353_v48, %v336_v47  ;;  %v349_v52 = vrot.slane %v344_v49, 4  ;;  %v352_v53 = vsel %vm301_vm0, %v344_v49, %v351_v50  ;;  %v355_v54 = vrot.slane %v336_v47, 4 }
  0xae   : > { %362 = vrot.lane.b32.xlu0 %v354_v51, %s1786_s17  ;;  %358 = vrot.lane.b32.xlu2 %v352_v53, %s1787_s23 }
  0xaf   : > { %v356_v55 = vsel %vm301_vm0, %v348_v43, %v355_v54  ;;  %v350_v56 = vsel %vm301_vm0, %v349_v52, %v332_v44 }
  0xb0   : > { %366 = vrot.lane.b32.xlu1 %v356_v55, %s1788_s25 }
 0x108   : > { %v359_v61 = vpop.permute.xlu2 %358 }
 0x109   : > { %v370_v62 = vsel %vm369_vm1, %v350_v56, %v359_v61 }
 0x120   : > { %v363_v63 = vpop.permute.xlu0 %362 }
 0x121   : > { %v372_v2 = vsel %vm371_vm2, %v370_v62, %v363_v63 }
 0x122   : > { %v367_v3 = vpop.permute.xlu1 %366 }
 0x123   : > { %v374_v4 = vsel %vm373_vm3, %v372_v2, %v367_v3 }
 0x124   : > { %v378_v5 = vsub.f32 %v374_v4, %v1682_v0 }
 0x126   : > { %v379_v6 = vadd.f32 0.57142854, %v378_v5  ;;  %v382_v7 = vmax.f32 %v378_v5, 0.0 }
 0x128   : > { %v380_v8 = vmax.f32 %v379_v6, 0.0  ;;  %v383_v10 = vmin.f32 %v382_v7, 0.57142854 }
 0x12a   : > { %v381_v9 = vmin.f32 %v380_v8, 0.57142854 }
 0x12c   : > { %v384_v11 = vsub.f32 %v381_v9, %v383_v10 }
 0x12e   : > { %v385_v12 = vmul.f32 1.7500001, %v384_v11 }
 0x130   : > { %v386_v13 = vpack.c.bf16 %v385_v12, %v385_v12 }
 0x132   : > { %1507 = vmatmul.msk.bf16.vlgmr.msra.gmra.mxu0 %vm399_vm4, %v386_v13 }
 0x1af   : > { %v412_v14 = vpop.f32.mrf.mxu0 }
 0x1b0   : > { %v449_v15 = vperm.slane %v412_v14, 0  ;;  %v524_v18 = vperm.slane %v412_v14, 3  ;;  %v499_v19 = vperm.slane %v412_v14, 2  ;;  %v1945_v21 = vperm.slane %v412_v14, 1 }
 0x1b1   : > { %v1948_v22 = vperm.slane %v412_v14, 4  ;;  %v599_v23 = vperm.slane %v412_v14, 6  ;;  %v624_v24 = vperm.slane %v412_v14, 7  ;;  %v574_v25 = vperm.slane %v412_v14, 5 }
 0x1b2   : > { %466 = vperm.xlu1 %1667, %v449_v15   ;;  %460 = vperm.xlu0 %1666, %v449_v15  }
 0x1b3   : > { %454 = vperm.xlu2 %1665, %v449_v15  }
 0x1b7   : > { %v414_v16 = vpop.f32.mrf.mxu0 }
 0x1ba   : > { %541 = vperm.xlu1 %1667, %v524_v18   ;;  %1670 = vset.pattern.permute.xlu0 %v464_v59 }
 0x1bb   : > { %1668 = vset.pattern.permute.xlu2 %v470_v17 }
 0x1c2   : > { %516 = vperm.xlu1 %1667, %v499_v19   ;;  %491 = vperm.xlu0 %1670, %v1945_v21  }
 0x1c3   : > { %472 = vperm.xlu2 %1668, %v449_v15  }
 0x1ca   : > { %566 = vperm.xlu1 %1667, %v1948_v22   ;;  %1671 = vset.pattern.permute.xlu0 %v1890_v1 }
 0x1cb   : > { %1669 = vset.pattern.permute.xlu2 %v464_v59 }
 0x1d2   : > { %1672 = vset.pattern.permute.xlu1 %v1890_v1  ;;  %529 = vperm.xlu0 %1671, %v524_v18  }
 0x1d3   : > { %616 = vperm.xlu2 %1669, %v599_v23  }
 0x1da   : > { %604 = vperm.xlu1 %1672, %v599_v23   ;;  %1675 = vset.pattern.permute.xlu0 %v470_v17 }
 0x1db   : > { %641 = vperm.xlu2 %1669, %v624_v24  }
 0x1e2   : > { %479 = vperm.xlu1 %1672, %v1945_v21   ;;  %547 = vperm.xlu0 %1675, %v524_v18  }
 0x1e3   : > { %591 = vperm.xlu2 %1669, %v574_v25  }
 0x1ea   : > { %629 = vperm.xlu1 %1672, %v624_v24   ;;  %622 = vperm.xlu0 %1675, %v599_v23  }
 0x1eb   : > { %1673 = vset.pattern.permute.xlu2 %v470_v17 }
 0x1f2   : > { %579 = vperm.xlu1 %1672, %v574_v25   ;;  %572 = vperm.xlu0 %1675, %v1948_v22  }
 0x1f3   : > { %647 = vperm.xlu2 %1673, %v624_v24  }
 0x1fa   : > { %1677 = vset.pattern.permute.xlu1 %v470_v17  ;;  %1680 = vset.pattern.permute.xlu0 %v1934_v60 }
 0x1fb   : > { %1674 = vset.pattern.permute.xlu2 %v1890_v1 }
 0x202   : > { %497 = vperm.xlu1 %1677, %v1945_v21   ;;  %585 = vperm.xlu0 %1680, %v574_v25  }
 0x203   : > { %504 = vperm.xlu2 %1674, %v499_v19  }
 0x20a   : > { %1678 = vset.pattern.permute.xlu1 %v1934_v60  ;;  %1681 = vset.pattern.permute.xlu0 %v470_v17 }
 0x20b   : > { %554 = vperm.xlu2 %1674, %v1948_v22  }
 0x20d   : > { %v1960_v26 = vpop.permute.xlu2 %454 }
 0x212   : > { %635 = vperm.xlu1 %1678, %v624_v24  }
 0x213   : > { %1676 = vset.pattern.permute.xlu2 %v470_v17 }
 0x21a   : > { %610 = vperm.xlu1 %1678, %v599_v23  }
 0x21b   : > { %597 = vperm.xlu2 %1676, %v574_v25  }
 0x21d   : > { %v1962_v28 = vpop.permute.xlu2 %472 }
 0x222   : > { %510 = vperm.xlu1 %1678, %v499_v19  }
 0x223   : > { %522 = vperm.xlu2 %1676, %v499_v19  }
 0x224   : > { %v467_v27 = vpop.permute.xlu1 %466  ;;  %v1965_v1 = vpop.permute.xlu0 %460 }
 0x225   : > { %v875_v56 = vrot.slane %v467_v27, 4 }
 0x22b   : > { %1679 = vset.pattern.permute.xlu2 %v1934_v60 }
 0x22c   : > { %v542_v29 = vpop.permute.xlu1 %541 }
 0x22d   : > { %v617_v30 = vpop.permute.xlu2 %616  ;;  %v885_v31 = vrot.slane %v542_v29, 4 }
 0x22e   : > { %v897_v43 = vrot.slane %v617_v30, 4 }
 0x233   : > { %535 = vperm.xlu2 %1679, %v524_v18  }
 0x234   : > { %v517_v32 = vpop.permute.xlu1 %516  ;;  %v492_v33 = vpop.permute.xlu0 %491 }
 0x235   : > { %v873_v35 = vrot.slane %v517_v32, 4  ;;  %v886_v36 = vsel %vm301_vm0, %v885_v31, %v492_v33  ;;  %v642_v37 = vpop.permute.xlu2 %641  ;;  %v887_v40 = vrot.slane %v492_v33, 4  ;;  %v876_v63 = vsel %vm301_vm0, %v517_v32, %v875_v56 }
 0x236   : > { %v892_v38 = vperm.slane %v886_v36, %v1899_v20  ;;  %v909_v45 = vrot.slane %v642_v37, 4  ;;  %v884_v10 = vperm.slane %v876_v63, %v1899_v20 }
 0x237   : > { %v874_v39 = vsel %vm301_vm0, %v873_v35, %v467_v27  ;;  %v888_v44 = vsel %vm301_vm0, %v542_v29, %v887_v40 }
 0x238   : > { %v880_v41 = vperm.slane %v874_v39, %v1899_v20  ;;  %v921_v42 = vrot.slane %v892_v38, 4  ;;  %v896_v52 = vperm.slane %v888_v44, %v1899_v20  ;;  %v935_v24 = vrot.slane %v884_v10, 4 }
 0x23a   : > { %v923_v47 = vrot.slane %v880_v41, 4  ;;  %v922_v51 = vsel %vm301_vm0, %v921_v42, %v880_v41  ;;  %v933_v4 = vrot.slane %v896_v52, 4  ;;  %v936_v35 = vsel %vm301_vm0, %v896_v52, %v935_v24 }
 0x23b   : > { %485 = vperm.xlu2 %1679, %v1945_v21   ;;  %v928_v62 = vperm.slane %v922_v51, %v1907_v34  ;;  %v944_v39 = vperm.slane %v936_v35, %v1907_v34 }
 0x23c   : > { %v567_v46 = vpop.permute.xlu1 %566  ;;  %v924_v3 = vsel %vm301_vm0, %v892_v38, %v923_v47  ;;  %v934_v18 = vsel %vm301_vm0, %v933_v4, %v884_v10 }
 0x23d   : > { %v898_v48 = vsel %vm301_vm0, %v897_v43, %v567_v46  ;;  %v899_v49 = vrot.slane %v567_v46, 4  ;;  %v592_v50 = vpop.permute.xlu2 %591  ;;  %v971_v12 = vrot.slane %v928_v62, 4  ;;  %v932_v13 = vperm.slane %v924_v3, %v1907_v34 }
 0x23e   : > { %v904_v53 = vperm.slane %v898_v48, %v1899_v20  ;;  %v910_v54 = vsel %vm301_vm0, %v909_v45, %v592_v50  ;;  %v911_v55 = vrot.slane %v592_v50, 4  ;;  %v940_v25 = vperm.slane %v934_v18, %v1907_v34 }
 0x23f   : > { %v900_v57 = vsel %vm301_vm0, %v617_v30, %v899_v49  ;;  %v916_v58 = vperm.slane %v910_v54, %v1899_v20  ;;  %v975_v23 = vrot.slane %v932_v13, 4  ;;  %v983_v43 = vrot.slane %v944_v39, 4 }
 0x240   : > { %v908_v59 = vperm.slane %v900_v57, %v1899_v20  ;;  %v947_v60 = vrot.slane %v904_v53, 4  ;;  %v912_v61 = vsel %vm301_vm0, %v642_v37, %v911_v55  ;;  %v979_v33 = vrot.slane %v940_v25, 4 }
 0x241   : > { %v920_v0 = vperm.slane %v912_v61, %v1899_v20  ;;  %v945_v2 = vrot.slane %v916_v58, 4 }
 0x242   : > { %v948_v5 = vsel %vm301_vm0, %v916_v58, %v947_v60  ;;  %v959_v6 = vrot.slane %v908_v59, 4 }
 0x243   : > { %v957_v7 = vrot.slane %v920_v0, 4  ;;  %560 = vperm.xlu2 %1679, %v1948_v22   ;;  %v946_v8 = vsel %vm301_vm0, %v945_v2, %v904_v53  ;;  %v956_v9 = vperm.slane %v948_v5, %v1907_v34 }
 0x244   : > { %v952_v11 = vperm.slane %v946_v8, %v1907_v34  ;;  %v960_v22 = vsel %vm301_vm0, %v920_v0, %v959_v6  ;;  %v2022_v44 = vpop.permute.xlu0 %529 }
 0x245   : > { %v973_v14 = vrot.slane %v956_v9, 4  ;;  %v958_v15 = vsel %vm301_vm0, %v957_v7, %v908_v59  ;;  %v976_v29 = vsel %vm301_vm0, %v956_v9, %v975_v23  ;;  %v968_v31 = vperm.slane %v960_v22, %v1907_v34 }
 0x246   : > { %v972_v16 = vsel %vm301_vm0, %v952_v11, %v971_v12  ;;  %v969_v17 = vrot.slane %v952_v11, 4  ;;  %v964_v19 = vperm.slane %v958_v15, %v1907_v34  ;;  %v661_v46 = vrot.slane %v2022_v44, 4 }
 0x247   : > { %1158 = vrot.lane.b32.xlu0 %v972_v16, %s1787_s23  ;;  %v974_v21 = vsel %vm301_vm0, %v973_v14, %v932_v13  ;;  %v981_v37 = vrot.slane %v968_v31, 4  ;;  %v984_v45 = vsel %vm301_vm0, %v968_v31, %v983_v43 }
 0x248   : > { %1162 = vrot.lane.b32.xlu1 %v974_v21, %s1786_s17  ;;  %v2003_v27 = vsel %vm301_vm0, %v969_v17, %v928_v62  ;;  %v977_v30 = vrot.slane %v964_v19, 4  ;;  %v980_v38 = vsel %vm301_vm0, %v964_v19, %v979_v33 }
 0x249   : > { %v982_v40 = vsel %vm301_vm0, %v981_v37, %v944_v39 }
 0x24a   : > { %v978_v36 = vsel %vm301_vm0, %v977_v30, %v940_v25 }
 0x24b   : > { %1166 = vrot.lane.b32.xlu2 %v976_v29, %s1788_s25 }
 0x24c   : > { %v2008_v32 = vpop.permute.xlu1 %604 }
 0x24d   : > { %v2020_v42 = vpop.permute.xlu2 %647  ;;  %v673_v58 = vrot.slane %v2008_v32, 4 }
 0x24e   : > { %v1021_v25 = vrot.slane %v2020_v42, 4 }
 0x24f   : > { %1170 = vrot.lane.b32.xlu0 %v978_v36, %s1789_s10 }
 0x250   : > { %1174 = vrot.lane.b32.xlu1 %v980_v38, %s1790_s11 }
 0x253   : > { %1178 = vrot.lane.b32.xlu2 %v982_v40, %s1791_s12 }
 0x254   : > { %v2018_v41 = vpop.permute.xlu1 %479  ;;  %v2032_v51 = vpop.permute.xlu0 %547 }
 0x255   : > { %v662_v47 = vsel %vm301_vm0, %v661_v46, %v2018_v41  ;;  %v663_v35 = vrot.slane %v2018_v41, 4  ;;  %v997_v39 = vrot.slane %v2032_v51, 4 }
 0x256   : > { %v668_v50 = vperm.slane %v662_v47, %v1899_v20 }
 0x257   : > { %v664_v41 = vsel %vm301_vm0, %v2022_v44, %v663_v35 }
 0x258   : > { %1182 = vrot.lane.b32.xlu1 %v984_v45, %s1792_s13  ;;  %v697_v55 = vrot.slane %v668_v50, 4 }
 0x25c   : > { %v630_v48 = vpop.permute.xlu1 %629  ;;  %v2046_v5 = vpop.permute.xlu0 %622 }
 0x25d   : > { %v2029_v49 = vpop.permute.xlu2 %504  ;;  %v685_v56 = vrot.slane %v630_v48, 4  ;;  %v1009_v23 = vrot.slane %v2046_v5, 4 }
 0x25e   : > { %v649_v52 = vrot.slane %v2029_v49, 4 }
 0x260   : > { %v650_v53 = vsel %vm301_vm0, %v649_v52, %v1960_v26 }
 0x261   : > { %v656_v54 = vperm.slane %v650_v53, %v1899_v20 }
 0x263   : > { %v699_v57 = vrot.slane %v656_v54, 4  ;;  %v698_v60 = vsel %vm301_vm0, %v697_v55, %v656_v54 }
 0x264   : > { %v580_v59 = vpop.permute.xlu1 %579  ;;  %v704_v4 = vperm.slane %v698_v60, %v1907_v34  ;;  %v2062_v22 = vpop.permute.xlu0 %572 }
 0x265   : > { %v686_v61 = vsel %vm301_vm0, %v685_v56, %v580_v59  ;;  %v555_v62 = vpop.permute.xlu2 %554  ;;  %v700_v3 = vsel %vm301_vm0, %v668_v50, %v699_v57  ;;  %v687_v24 = vrot.slane %v580_v59, 4  ;;  %v1010_v29 = vsel %vm301_vm0, %v1009_v23, %v2062_v22 }
 0x266   : > { %v692_v63 = vperm.slane %v686_v61, %v1899_v20  ;;  %v674_v0 = vsel %vm301_vm0, %v673_v58, %v555_v62  ;;  %v708_v8 = vperm.slane %v700_v3, %v1907_v34  ;;  %v747_v12 = vrot.slane %v704_v4, 4 }
 0x267   : > { %v680_v2 = vperm.slane %v674_v0, %v1899_v20  ;;  %v675_v31 = vrot.slane %v555_v62, 4  ;;  %v688_v36 = vsel %vm301_vm0, %v630_v48, %v687_v24  ;;  %v1016_v40 = vperm.slane %v1010_v29, %v1899_v20 }
 0x268   : > { %v721_v6 = vrot.slane %v692_v63, 4  ;;  %v751_v14 = vrot.slane %v708_v8, 4  ;;  %v696_v45 = vperm.slane %v688_v36, %v1899_v20  ;;  %v651_v48 = vrot.slane %v1960_v26, 4 }
 0x269   : > { %v723_v7 = vrot.slane %v680_v2, 4  ;;  %v676_v46 = vsel %vm301_vm0, %v2008_v32, %v675_v31  ;;  %v1059_v50 = vrot.slane %v1016_v40, 4  ;;  %v672_v56 = vperm.slane %v664_v41, %v1899_v20 }
 0x26a   : > { %v722_v9 = vsel %vm301_vm0, %v721_v6, %v680_v2  ;;  %v684_v52 = vperm.slane %v676_v46, %v1899_v20  ;;  %v733_v57 = vrot.slane %v696_v45, 4  ;;  %v652_v59 = vsel %vm301_vm0, %v2029_v49, %v651_v48 }
 0x26b   : > { %v724_v10 = vsel %vm301_vm0, %v692_v63, %v723_v7  ;;  %v728_v11 = vperm.slane %v722_v9, %v1907_v34  ;;  %v987_v3 = vrot.slane %v1962_v28, 4  ;;  %v660_v49 = vperm.slane %v652_v59, %v1899_v20 }
 0x26c   : > { %v732_v13 = vperm.slane %v724_v10, %v1907_v34  ;;  %v735_v62 = vrot.slane %v684_v52, 4  ;;  %v734_v6 = vsel %vm301_vm0, %v733_v57, %v684_v52  ;;  %v1011_v7 = vrot.slane %v2062_v22, 4 }
 0x26d   : > { %v748_v15 = vsel %vm301_vm0, %v728_v11, %v747_v12  ;;  %v745_v16 = vrot.slane %v728_v11, 4  ;;  %v711_v22 = vrot.slane %v660_v49, 4 }
 0x26e   : > { %v752_v17 = vsel %vm301_vm0, %v732_v13, %v751_v14  ;;  %1098 = vrot.lane.b32.xlu0 %v748_v15, %s1787_s23  ;;  %v749_v18 = vrot.slane %v732_v13, 4  ;;  %v1012_v35 = vsel %vm301_vm0, %v2046_v5, %v1011_v7  ;;  %s1797_s23 = smov 104  }
 0x26f   : > { %1106 = vrot.lane.b32.xlu1 %v752_v17, %s1788_s25  ;;  %v2058_v19 = vsel %vm301_vm0, %v745_v16, %v704_v4  ;;  %v709_v4 = vrot.slane %v672_v56, 4  ;;  %v740_v16 = vperm.slane %v734_v6, %v1907_v34  ;;  %v736_v17 = vsel %vm301_vm0, %v696_v45, %v735_v62  ;;  %s1798_s25 = smov 96  }
 0x270   : > { %v750_v21 = vsel %vm301_vm0, %v749_v18, %v708_v8  ;;  %v744_v31 = vperm.slane %v736_v17, %v1907_v34  ;;  %v1020_v46 = vperm.slane %v1012_v35, %v1899_v20 }
 0x271   : > { %1102 = vrot.lane.b32.xlu2 %v750_v21, %s1786_s17  ;;  %s1796_s17 = smov 88  }
 0x272   : > { %v757_v45 = vrot.slane %v744_v31, 4 }
 0x274   : > { %v498_v37 = vpop.permute.xlu1 %497 }
 0x275   : > { %v598_v30 = vpop.permute.xlu2 %597  ;;  %v998_v47 = vsel %vm301_vm0, %v997_v39, %v498_v37  ;;  %v999_v44 = vrot.slane %v498_v37, 4  ;;  %v753_v37 = vrot.slane %v740_v16, 4 }
 0x276   : > { %v1022_v33 = vsel %vm301_vm0, %v1021_v25, %v598_v30  ;;  %v1004_v53 = vperm.slane %v998_v47, %v1899_v20  ;;  %v1023_v60 = vrot.slane %v598_v30, 4  ;;  %v710_v25 = vsel %vm301_vm0, %v709_v4, %v660_v49 }
 0x277   : > { %v1028_v38 = vperm.slane %v1022_v33, %v1899_v20  ;;  %v1000_v10 = vsel %vm301_vm0, %v2032_v51, %v999_v44  ;;  %v716_v36 = vperm.slane %v710_v25, %v1907_v34 }
 0x278   : > { %v1033_v63 = vrot.slane %v1004_v53, 4  ;;  %v1024_v11 = vsel %vm301_vm0, %v2020_v42, %v1023_v60  ;;  %v2115_v23 = vperm.slane %v1000_v10, %v1899_v20  ;;  %v1071_v10 = vrot.slane %v1020_v46, 4 }
 0x279   : > { %v1057_v43 = vrot.slane %v1028_v38, 4  ;;  %v1060_v32 = vsel %vm301_vm0, %v1028_v38, %v1059_v50  ;;  %v2118_v24 = vperm.slane %v1024_v11, %v1899_v20  ;;  %v754_v50 = vsel %vm301_vm0, %v753_v37, %v716_v36 }
 0x27a   : > { %v2093_v2 = vperm.slane %v1060_v32, %v1907_v34  ;;  %v1045_v38 = vrot.slane %v2115_v23, 4  ;;  %v755_v48 = vrot.slane %v716_v36, 4 }
 0x27b   : > { %v1058_v55 = vsel %vm301_vm0, %v1057_v43, %v1016_v40  ;;  %v1069_v39 = vrot.slane %v2118_v24, 4  ;;  %v712_v40 = vsel %vm301_vm0, %v672_v56, %v711_v22 }
 0x27c   : > { %v1064_v61 = vperm.slane %v1058_v55, %v1907_v34  ;;  %v1085_v15 = vrot.slane %v2093_v2, 4  ;;  %v720_v5 = vperm.slane %v712_v40, %v1907_v34 }
 0x27d   : > { %v523_v54 = vpop.permute.xlu2 %522  ;;  %v1070_v52 = vsel %vm301_vm0, %v1069_v39, %v1020_v46 }
 0x27e   : > { %v985_v58 = vrot.slane %v523_v54, 4  ;;  %v1081_v13 = vrot.slane %v1064_v61, 4  ;;  %v988_v18 = vsel %vm301_vm0, %v523_v54, %v987_v3  ;;  %v756_v54 = vsel %vm301_vm0, %v740_v16, %v755_v48 }
 0x27f   : > { %v996_v33 = vperm.slane %v988_v18, %v1899_v20  ;;  %v1076_v57 = vperm.slane %v1070_v52, %v1907_v34  ;;  %v1072_v18 = vsel %vm301_vm0, %v2118_v24, %v1071_v10 }
 0x280   : > { %v986_v26 = vsel %vm301_vm0, %v985_v58, %v1962_v28  ;;  %v1080_v35 = vperm.slane %v1072_v18, %v1907_v34 }
 0x281   : > { %v992_v0 = vperm.slane %v986_v26, %v1899_v20  ;;  %v1046_v47 = vsel %vm301_vm0, %v1045_v38, %v996_v33 }
 0x282   : > { %v1052_v55 = vperm.slane %v1046_v47, %v1907_v34 }
 0x283   : > { %v1035_v8 = vrot.slane %v992_v0, 4  ;;  %v1034_v9 = vsel %vm301_vm0, %v1033_v63, %v992_v0  ;;  %v1089_v63 = vrot.slane %v1076_v57, 4  ;;  %v586_v0 = vpop.permute.xlu0 %585 }
 0x284   : > { %v2104_v12 = vpop.permute.xlu1 %635  ;;  %v1040_v28 = vperm.slane %v1034_v9, %v1907_v34  ;;  %v1091_v44 = vrot.slane %v1052_v55, 4  ;;  %v1047_v9 = vrot.slane %v996_v33, 4  ;;  %v799_v33 = vrot.slane %v586_v0, 4 }
 0x285   : > { %v1036_v14 = vsel %vm301_vm0, %v1004_v53, %v1035_v8  ;;  %v758_v53 = vsel %vm301_vm0, %v757_v45, %v720_v5  ;;  %v797_v32 = vrot.slane %v2104_v12, 4  ;;  %v1090_v8 = vsel %vm301_vm0, %v1089_v63, %v1052_v55 }
 0x286   : > { %v1082_v51 = vsel %vm301_vm0, %v1081_v13, %v1040_v28  ;;  %v1044_v21 = vperm.slane %v1036_v14, %v1907_v34  ;;  %v1083_v42 = vrot.slane %v1040_v28, 4  ;;  %v1092_v7 = vsel %vm301_vm0, %v1076_v57, %v1091_v44 }
 0x287   : > { %1186 = vrot.lane.b32.xlu0 %v1082_v51, %s1793_s14  ;;  %v798_v6 = vsel %vm301_vm0, %v797_v32, %v586_v0  ;;  %v759_v28 = vrot.slane %v720_v5, 4  ;;  %v1048_v17 = vsel %vm301_vm0, %v2115_v23, %v1047_v9  ;;  %v800_v39 = vsel %vm301_vm0, %v2104_v12, %v799_v33  ;;  %v1591_v33 = vld [vmem:[#allocation2 + $0x68] sm:$0xff] }
 0x288   : > { %v1086_v29 = vsel %vm301_vm0, %v1085_v15, %v1044_v21  ;;  %v1084_v30 = vsel %vm301_vm0, %v1064_v61, %v1083_v42  ;;  %v1087_v56 = vrot.slane %v1044_v21, 4  ;;  %v804_v11 = vperm.slane %v798_v6, %v1899_v20 }
 0x289   : > { %1194 = vrot.lane.b32.xlu1 %v1086_v29, %s1794_s15  ;;  %1190 = vrot.lane.b32.xlu2 %v1084_v30, %s1795_s16  ;;  %v760_v16 = vsel %vm301_vm0, %v744_v31, %v759_v28  ;;  %v763_v31 = vrot.slane %v1965_v1, 4  ;;  %v1056_v38 = vperm.slane %v1048_v17, %v1907_v34  ;;  %v1093_v5 = vrot.slane %v1080_v35, 4 }
 0x28a   : > { %v1088_v62 = vsel %vm301_vm0, %v2093_v2, %v1087_v56  ;;  %v833_v25 = vrot.slane %v804_v11, 4  ;;  %v808_v52 = vperm.slane %v800_v39, %v1899_v20  ;;  %v1585_v39 = vld [vmem:[#allocation2 + $0x38] sm:$0xff] }
 0x28b   : > { %1377 = vmatpush.bf16.msra.mxu1 %v1585_v39 }
 0x28c   : > { %v611_v43 = vpop.permute.xlu1 %610  ;;  %v845_v32 = vrot.slane %v808_v52, 4 }
 0x28d   : > { %v2136_v41 = vpop.permute.xlu2 %535  ;;  %v785_v14 = vrot.slane %v611_v43, 4 }
 0x28e   : > { %v773_v58 = vrot.slane %v2136_v41, 4 }
 0x28f   : > { %1110 = vrot.lane.b32.xlu0 %v754_v50, %s1789_s10  ;;  %s1497_s10 = sshll.u32 %s230_s8, 3 }
 0x291   : > { %1118 = vrot.lane.b32.xlu1 %v758_v53, %s1791_s12  ;;  %1114 = vrot.lane.b32.xlu2 %v756_v54, %s1790_s11 }
 0x294   : > { %v511_v59 = vpop.permute.xlu1 %510 }
 0x295   : > { %v761_v60 = vrot.slane %v511_v59, 4  ;;  %v486_v26 = vpop.permute.xlu2 %485  ;;  %v764_v47 = vsel %vm301_vm0, %v511_v59, %v763_v31 }
 0x296   : > { %v774_v61 = vsel %vm301_vm0, %v773_v58, %v486_v26  ;;  %v775_v51 = vrot.slane %v486_v26, 4  ;;  %v772_v57 = vperm.slane %v764_v47, %v1899_v20  ;;  %v1095_v26 = vrot.slane %v1056_v38, 4 }
 0x297   : > { %v762_v3 = vsel %vm301_vm0, %v761_v60, %v1965_v1  ;;  %v780_v4 = vperm.slane %v774_v61, %v1899_v20  ;;  %1198 = vrot.lane.b32.xlu0 %v1088_v62, %s1796_s17 }
 0x298   : > { %v768_v49 = vperm.slane %v762_v3, %v1899_v20  ;;  %v776_v40 = vsel %vm301_vm0, %v2136_v41, %v775_v51  ;;  %v1094_v41 = vsel %vm301_vm0, %v1093_v5, %v1056_v38  ;;  %v823_v61 = vrot.slane %v772_v57, 4  ;;  %v1589_v38 = vld [vmem:[#allocation2 + $0x58] sm:$0xff]  ;;  %v1583_v5 = vld [vmem:[#allocation2 + $0x28] sm:$0xff] }
 0x299   : > { %v809_v2 = vrot.slane %v780_v4, 4  ;;  %1206 = vrot.lane.b32.xlu1 %v1092_v7, %s1797_s23  ;;  %1202 = vrot.lane.b32.xlu2 %v1090_v8, %s1798_s25  ;;  %v784_v12 = vperm.slane %v776_v40, %v1899_v20 }
 0x29a   : > { %v811_v29 = vrot.slane %v768_v49, 4 }
 0x29b   : > { %v810_v13 = vsel %vm301_vm0, %v809_v2, %v768_v49  ;;  %v821_v58 = vrot.slane %v784_v12, 4  ;;  %v824_v49 = vsel %vm301_vm0, %v784_v12, %v823_v61 }
 0x29c   : > { %v816_v22 = vperm.slane %v810_v13, %v1907_v34  ;;  %v832_v9 = vperm.slane %v824_v49, %v1907_v34 }
 0x29d   : > { %v561_v15 = vpop.permute.xlu2 %560 }
 0x29e   : > { %v786_v21 = vsel %vm301_vm0, %v785_v14, %v561_v15  ;;  %v787_v42 = vrot.slane %v561_v15, 4  ;;  %v859_v45 = vrot.slane %v816_v22, 4  ;;  %v871_v14 = vrot.slane %v832_v9, 4 }
 0x29f   : > { %v792_v30 = vperm.slane %v786_v21, %v1899_v20  ;;  %1122 = vrot.lane.b32.xlu0 %v760_v16, %s1792_s13  ;;  %s1415_s13 = scalar_lea.hbm %s2295_s5, %s1573_s9 }
 0x2a0   : > { %v788_v23 = vsel %vm301_vm0, %v611_v43, %v787_v42  ;;  %v812_v43 = vsel %vm301_vm0, %v780_v4, %v811_v29  ;;  %v1096_v4 = vsel %vm301_vm0, %v1080_v35, %v1095_v26  ;;  %v1592_v29 = vld [vmem:[#allocation2 + $0x70] sm:$0xff]  ;;  %v1590_v35 = vld [vmem:[#allocation2 + $0x60] sm:$0xff] }
 0x2a1   : > { %v796_v24 = vperm.slane %v788_v23, %v1899_v20  ;;  %v835_v36 = vrot.slane %v792_v30, 4  ;;  %v834_v37 = vsel %vm301_vm0, %v833_v25, %v792_v30  ;;  %v820_v55 = vperm.slane %v812_v43, %v1907_v34 }
 0x2a2   : > { %v840_v1 = vperm.slane %v834_v37, %v1907_v34  ;;  %v822_v20 = vsel %vm301_vm0, %v821_v58, %v772_v57 }
 0x2a3   : > { %v836_v46 = vsel %vm301_vm0, %v804_v11, %v835_v36  ;;  %v847_v53 = vrot.slane %v796_v24, 4  ;;  %v863_v44 = vrot.slane %v820_v55, 4  ;;  %v846_v62 = vsel %vm301_vm0, %v845_v32, %v796_v24  ;;  %v1581_v32 = vld [vmem:[#allocation2 + $0x18] sm:$0xff] }
 0x2a4   : > { %v860_v50 = vsel %vm301_vm0, %v840_v1, %v859_v45  ;;  %v857_v48 = vrot.slane %v840_v1, 4  ;;  %v844_v56 = vperm.slane %v836_v46, %v1907_v34  ;;  %v852_v6 = vperm.slane %v846_v62, %v1907_v34  ;;  %v1588_v1 = vld [vmem:[#allocation2 + $0x50] sm:$0xff] }
 0x2a5   : > { %1130 = vrot.lane.b32.xlu1 %v860_v50, %s1795_s16  ;;  %v848_v59 = vsel %vm301_vm0, %v808_v52, %v847_v53  ;;  %v828_v8 = vperm.slane %v822_v20, %v1907_v34  ;;  %v1167_v16 = vpop.permute.xlu2 %1166  ;;  %v1584_v45 = vld [vmem:[#allocation2 + $0x30] sm:$0xff]  ;;  %v1587_v50 = vld [vmem:[#allocation2 + $0x48] sm:$0xff]  ;;  %s1419_s16 = sshll.u32 %s1415_s13, 4  ;;  %s1420_s16 = int_to_ptr.hbm [resolvable:$true] %s1419_s16 }
 0x2a6   : > { %v858_v54 = vsel %vm301_vm0, %v857_v48, %v816_v22  ;;  %v861_v60 = vrot.slane %v844_v56, 4  ;;  %v864_v63 = vsel %vm301_vm0, %v844_v56, %v863_v44  ;;  %v856_v0 = vperm.slane %v848_v59, %v1907_v34  ;;  %v1593_v22 = vld [vmem:[#allocation2 + $0x78] sm:$0xff]  ;;  %1378 = vmatpush.bf16.msra.mxu1 %v1584_v45  ;;  %v1580_v59 = vld [vmem:[#allocation2 + $0x10] sm:$0xff] }
 0x2a7   : > { %1210 = vrot.lane.b32.xlu0 %v1094_v41, %s1799_s26  ;;  %1126 = vrot.lane.b32.xlu2 %v858_v54, %s1793_s14  ;;  %v865_v2 = vrot.slane %v852_v6, 4  ;;  %v867_v11 = vrot.slane %v828_v8, 4  ;;  %v1582_v41 = vld [vmem:[#allocation2 + $0x20] sm:$0xff]  ;;  %s232_s14 = scalar_lea.vmem [#allocation5], %s1497_s10 }
 0x2a8   : > { %v862_v3 = vsel %vm301_vm0, %v861_v60, %v820_v55  ;;  %v869_v7 = vrot.slane %v856_v0, 4  ;;  %v872_v15 = vsel %vm301_vm0, %v856_v0, %v871_v14  ;;  %1390 = vmatpush.bf16.msra.mxu2 %v1593_v22 }
 0x2a9   : > { %v868_v28 = vsel %vm301_vm0, %v852_v6, %v867_v11  ;;  %v866_v13 = vsel %vm301_vm0, %v865_v2, %v828_v8  ;;  %v1578_v6 = vld [vmem:[#allocation2] sm:$0xff] }
 0x2aa   : > { %v870_v10 = vsel %vm301_vm0, %v869_v7, %v832_v9  ;;  %1379 = vmatpush.bf16.msra.mxu1 %v1583_v5 }
 0x2ac   : > { %1391 = vmatpush.bf16.msra.mxu2 %v1592_v29 }
 0x2ad   : > { %1138 = vrot.lane.b32.xlu1 %v864_v63, %s1796_s17  ;;  %v1179_v18 = vpop.permute.xlu2 %1178  ;;  %v1579_v63 = vld [vmem:[#allocation2 + $0x8] sm:$0xff]  ;;  %s1405_s17 = scalar_lea.sflag [#allocation4], %s230_s8 }
 0x2ae   : > { %1380 = vmatpush.bf16.msra.mxu1 %v1582_v41 }
 0x2af   : > { %1134 = vrot.lane.b32.xlu0 %v862_v3, %s1794_s15  ;;  %1214 = vrot.lane.b32.xlu2 %v1096_v4, %s1800_s30  ;;  %v416_v3 = vld [vmem:[%s2293_s3] sm:$0x3]  ;;  %s1417_s15 = sshll.u32 %s232_s14, 4  ;;  %s1418_s15 = int_to_ptr.vmem [resolvable:$true] %s1417_s15 }
 0x2b0   : > { %1392 = vmatpush.bf16.msra.mxu2 %v1591_v33  ;;  %v1260_v9 = vperm.slane %v416_v3, 1 }
 0x2b2   : > { %1381 = vmatpush.bf16.msra.mxu1 %v1581_v32 }
 0x2b4   : > { %1393 = vmatpush.bf16.msra.mxu2 %v1590_v35 }
 0x2b5   : > { %1150 = vrot.lane.b32.xlu1 %v870_v10, %s1799_s26 }
 0x2b6   : > { %1382 = vmatpush.bf16.msra.mxu1 %v1580_v59 }
 0x2b7   : > { %1146 = vrot.lane.b32.xlu0 %v868_v28, %s1797_s23  ;;  %1142 = vrot.lane.b32.xlu2 %v866_v13, %s1798_s25  ;;  %s1727_s23 = sshra.s32 %s1420_s16, 4  ;;  %s1728_s23 = int_to_ptr.hbm [resolvable:$true] %s1727_s23 }
 0x2b8   : > { %1394 = vmatpush.bf16.msra.mxu2 %v1589_v38  ;;  %v1259_v38 = vperm.slane %v416_v3, 0  ;;  %s1729_s25 = scalar_lea.hbm %s1728_s23, 8  ;;  %p1734_p3 = scmp.lt.s32.totalorder %s1728_s23, %s2295_s5 }
 0x2b9   : > { %v1159_v34 = vpop.permute.xlu0 %1158  ;;  %p1730_p0 = scmp.ne.s32.totalorder %s1728_s23, %s1729_s25 }
 0x2ba   : > { %v1163_v17 = vpop.permute.xlu1 %1162  ;;  %v1243_v40 = vsel %vm369_vm1, %v2003_v27, %v1159_v34  ;;  %v1586_v27 = vld [vmem:[#allocation2 + $0x40] sm:$0xff]  ;;  %1383 = vmatpush.bf16.msra.mxu1 %v1579_v63 }
 0x2bb   : > { %v1244_v43 = vsel %vm371_vm2, %v1243_v40, %v1163_v17  ;;  %p1731_p1 = pnand %p1730_p0, %p1869_p5 }
 0x2bc   : > { %1395 = vmatpush.bf16.msra.mxu2 %v1588_v1  ;;  %v1245_v47 = vsel %vm373_vm3, %v1244_v43, %v1167_v16 }
 0x2bd   : > { %p1732_p2 = pneg %p1731_p1 }
 0x2be   : > { %1384 = vmatpush.bf16.msra.mxu1 %v1578_v6 }
 0x2bf   : > { %1154 = vrot.lane.b32.xlu2 %v872_v15, %s1800_s30  ;;  %s1733_s30 = scalar_lea.hbm %s2295_s5, 16 }
 0x2c0   : > { %1396 = vmatpush.bf16.msra.mxu2 %v1587_v50  ;;  %p1735_p4 = scmp.lt.s32.totalorder %s1733_s30, %s1729_s25 }
 0x2c1   : > { %v1171_v21 = vpop.permute.xlu0 %1170 }
 0x2c2   : > { %v1175_v51 = vpop.permute.xlu1 %1174  ;;  %v1246_v48 = vsel %vm399_vm4, %v1245_v47, %v1171_v21  ;;  %p1736_p7 = por %p1735_p4, %p1734_p3 }
 0x2c3   : > { %v1247_v53 = vsel %vm1221_vm5, %v1246_v48, %v1175_v51 }
 0x2c4   : > { %v1248_v55 = vsel %vm1223_vm6, %v1247_v53, %v1179_v18  ;;  %1397 = vmatpush.bf16.msra.mxu2 %v1586_v27  ;;  %p1737_p8 = pnand %p1736_p7, %p1732_p2 }
 0x2ca   : > { %v1183_v25 = vpop.permute.xlu1 %1182 }
 0x2cb   : > { %v2217_v42 = vpop.permute.xlu2 %1102  ;;  %v1249_v56 = vsel %vm1225_vm7, %v1248_v55, %v1183_v25 }
 0x2e0   : > { %v1099_v30 = vpop.permute.xlu0 %1098 }
 0x2e1   : > { %v1107_v23 = vpop.permute.xlu1 %1106  ;;  %v1217_v26 = vsel %vm369_vm1, %v2058_v19, %v1099_v30 }
 0x2e2   : > { %v1218_v0 = vsel %vm371_vm2, %v1217_v26, %v2217_v42 }
 0x2e3   : > { %v1191_v31 = vpop.permute.xlu2 %1190  ;;  %v1219_v4 = vsel %vm373_vm3, %v1218_v0, %v1107_v23 }
 0x2eb   : > { %v2219_v36 = vpop.permute.xlu2 %1114 }
 0x2f3   : > { %v1203_v52 = vpop.permute.xlu2 %1202 }
 0x2f9   : > { %v1187_v24 = vpop.permute.xlu0 %1186 }
 0x2fa   : > { %v1250_v57 = vsel %vm1227_vm8, %v1249_v56, %v1187_v24 }
 0x2fb   : > { %v1195_v37 = vpop.permute.xlu1 %1194  ;;  %v1251_v44 = vsel %vm1229_vm9, %v1250_v57, %v1191_v31 }
 0x2fc   : > { %v1252_v62 = vsel %vm1231_vm10, %v1251_v44, %v1195_v37 }
 0x301   : > { %v1111_v46 = vpop.permute.xlu0 %1110  ;;  %v1127_v58 = vpop.permute.xlu2 %1126 }
 0x302   : > { %v1220_v49 = vsel %vm399_vm4, %v1219_v4, %v1111_v46 }
 0x303   : > { %v1119_v12 = vpop.permute.xlu1 %1118  ;;  %v1222_v11 = vsel %vm1221_vm5, %v1220_v49, %v2219_v36 }
 0x304   : > { %v1224_v15 = vsel %vm1223_vm6, %v1222_v11, %v1119_v12 }
 0x309   : > { %v1199_v54 = vpop.permute.xlu0 %1198  ;;  %v1215_v7 = vpop.permute.xlu2 %1214 }
 0x30a   : > { %v1253_v20 = vsel %vm1233_vm11, %v1252_v62, %v1199_v54 }
 0x30b   : > { %v1207_v60 = vpop.permute.xlu1 %1206  ;;  %v1254_v19 = vsel %vm1235_vm12, %v1253_v20, %v1203_v52 }
 0x30c   : > { %v1255_v2 = vsel %vm1237_vm13, %v1254_v19, %v1207_v60 }
 0x311   : > { %v1123_v61 = vpop.permute.xlu0 %1122  ;;  %v1143_v21 = vpop.permute.xlu2 %1142 }
 0x312   : > { %v1226_v16 = vsel %vm1225_vm7, %v1224_v15, %v1123_v61 }
 0x313   : > { %v1228_v42 = vsel %vm1227_vm8, %v1226_v16, %v1127_v58 }
 0x317   : > { %v1131_v8 = vpop.permute.xlu1 %1130 }
 0x318   : > { %v1230_v25 = vsel %vm1229_vm9, %v1228_v42, %v1131_v8 }
 0x319   : > { %v1211_v10 = vpop.permute.xlu0 %1210  ;;  %v1155_v1 = vpop.permute.xlu2 %1154 }
 0x31a   : > { %v1256_v28 = vsel %vm1239_vm14, %v1255_v2, %v1211_v10 }
 0x31b   : > { %v1257_v13 = vsel %vm1241_vm15, %v1256_v28, %v1215_v7 }
 0x31c   : > { %v1264_v14 = vsub.f32 %v1257_v13, %v1260_v9 }
 0x31e   : > { %v1266_v17 = vadd.f32 0.57142854, %v1264_v14  ;;  %v1272_v34 = vmax.f32 %v1264_v14, 0.0 }
 0x31f   : > { %v1139_v18 = vpop.permute.xlu1 %1138 }
 0x320   : > { %v1268_v51 = vmax.f32 %v1266_v17, 0.0  ;;  %v1274_v30 = vmin.f32 %v1272_v34, 0.57142854 }
 0x321   : > { %v1135_v22 = vpop.permute.xlu0 %1134 }
 0x322   : > { %v1270_v29 = vmin.f32 %v1268_v51, 0.57142854  ;;  %v1232_v31 = vsel %vm1231_vm10, %v1230_v25, %v1135_v22 }
 0x323   : > { %v1234_v23 = vsel %vm1233_vm11, %v1232_v31, %v1139_v18 }
 0x324   : > { %v1276_v33 = vsub.f32 %v1270_v29, %v1274_v30  ;;  %v1236_v37 = vsel %vm1235_vm12, %v1234_v23, %v1143_v21 }
 0x326   : > { %v1278_v35 = vmul.f32 1.7500001, %v1276_v33 }
 0x327   : > { %v1151_v39 = vpop.permute.xlu1 %1150 }
 0x328   : > { %v1280_v24 = vpack.c.bf16 %v1278_v35, %v1278_v35 }
 0x329   : > { %v1147_v36 = vpop.permute.xlu0 %1146 }
 0x32a   : > { %v1238_v40 = vsel %vm1237_vm13, %v1236_v37, %v1147_v36  ;;  %1398 = vmatmul.bf16.vlgmr.msra.gmra.mxu2 %v1280_v24 }
 0x32b   : > { %v1240_v45 = vsel %vm1239_vm14, %v1238_v40, %v1151_v39 }
 0x32c   : > { %v1242_v43 = vsel %vm1241_vm15, %v1240_v45, %v1155_v1 }
 0x32d   : > { %v1263_v46 = vsub.f32 %v1242_v43, %v1259_v38 }
 0x32f   : > { %v1265_v47 = vadd.f32 0.57142854, %v1263_v46  ;;  %v1271_v50 = vmax.f32 %v1263_v46, 0.0 }
 0x331   : > { %v1267_v5 = vmax.f32 %v1265_v47, 0.0  ;;  %v1273_v52 = vmin.f32 %v1271_v50, 0.57142854 }
 0x333   : > { %v1269_v48 = vmin.f32 %v1267_v5, 0.57142854 }
 0x335   : > { %v1275_v12 = vsub.f32 %v1269_v48, %v1273_v52 }
 0x337   : > { %v1277_v27 = vmul.f32 1.7500001, %v1275_v12 }
 0x339   : > { %v1279_v53 = vpack.c.bf16 %v1277_v27, %v1277_v27 }
 0x33b   : > { %1385 = vmatmul.bf16.vlgmr.msra.gmra.mxu1 %v1279_v53 }
 0x3ad   : > { %v1399_v41 = vpop.f32.mrf.mxu2 }
 0x3b5   : > { %v1401_v54 = vpop.f32.mrf.mxu2 }
 0x3b8   : > { %v1386_v55 = vpop.f32.mrf.mxu1 }
 0x3b9   : > { %v1400_v56 = vadd.f32 %v1399_v41, %v1386_v55 }
 0x3bb   : > { %1403 = vst [vmem:[%s232_s14] sm:$0xff] %v1400_v56 }
 0x3bc   : > { %1740 = shalt.err (!%p1737_p8)
}
 0x3bd   : > { %1598 = dma.vmem_to_hbm [thread:$0]  (%p1869_p5), %s1418_s15, 128, %s1420_s16, %s1405_s17  }
 0x3c0   : > { %v1388_v57 = vpop.f32.mrf.mxu1 }
 0x3c1 PF: > { %p1610_p9 = scmp.ge.s32.totalorder %s1779_s21, 2  ;;  %s1431_s8 = sand.u32 1, %s1767_s18  }
 0x3c2   : > { %s1432_s9 = scalar_lea.sflag [#allocation4], %s1431_s8 }
 0x3c3   : > { %p1605_p10 = pnand %p1610_p9, %p1873_p6 }
 0x3c5   : > { %p1606_p11 = pneg %p1605_p10 }
 0x3c7   : > { %1762 = dma.done.wait (%p1606_p11), %s1432_s9, 128  }
 0x3c8   : > { %1764 = vsyncadd (%p1606_p11), %s1432_s9, 4294967168  ;;  %p16_p12 = scmp.ge.s32.totalorder %s1856_s24, 4   ;;  %s2298_s18 = smov %s1771_s19 }
 0x3c9   : > { %s2299_s19 = smov %s1775_s20  ;;  %s2300_s20 = smov %s1867_s27 }
 0x3ca   : > { %s2301_s21 = smov %s1856_s24  ;;  %18 = sbr.rel (!%p16_p12) target bundleno = 4 (0x4), region = 80 }
 0x3cf   :  { %1438 = vsyncpa [#allocation3], 1 }
 0x3d0   :  { %1440 = vsyncpa [#allocation3 + $0x1], 1 }
 0x3d1   :  { %1441 = vsyncpa [#allocation4], 1 }
 0x3d2   :  { %1443 = vsyncpa [#allocation4 + $0x1], 1 }

</bundles_post_ra>
